<compile_context>
chip_gen: v7x
topology: tpu7x:2x2x1
jax: 0.10.0
libtpu: 0.0.40
codegen_flags: <defaults>
</compile_context>

<pallas_src>
import math
import functools

import jax
import jax.numpy as jnp
from jax import lax
from jax.experimental import pallas as pl
from jax.experimental.pallas import tpu as pltpu


# ------------------------------- helpers -------------------------------------
def _pick_tile(dim, pref):
    """Preferred (TPU-aligned) tile when it evenly divides `dim`, else the full
    dimension (a full-extent block is always a legal block shape)."""
    if dim <= pref or dim % pref != 0:
        return dim
    return pref


# ----------------------------- Linear kernel ----------------------------------
def linear_kernel(x_ref, w_ref, b_ref, o_ref, acc_ref):
    k = pl.program_id(2)

    @pl.when(k == 0)
    def _():
        acc_ref[...] = jnp.zeros_like(acc_ref)

    acc_ref[...] += jnp.dot(x_ref[...], w_ref[...],
                            preferred_element_type=jnp.float32)

    @pl.when(k == pl.num_programs(2) - 1)
    def _():
        o_ref[...] = (acc_ref[...] + b_ref[...]).astype(o_ref.dtype)


def pallas_linear(x, w_t, b, *, tm=256, tn=256, tk=512):
    """y = x @ w_t + b.   x: (M, K), w_t: (K, N), b: (N,) -> (M, N)."""
    M, K = x.shape
    N = w_t.shape[1]
    tm = _pick_tile(M, tm)
    tn = _pick_tile(N, tn)
    tk = _pick_tile(K, tk)
    grid = (M // tm, N // tn, K // tk)
    return pl.pallas_call(
        linear_kernel,
        out_shape=jax.ShapeDtypeStruct((M, N), jnp.float32),
        grid=grid,
        in_specs=[
            pl.BlockSpec((tm, tk), lambda i, j, k: (i, k)),
            pl.BlockSpec((tk, tn), lambda i, j, k: (k, j)),
            pl.BlockSpec((1, tn), lambda i, j, k: (0, j)),
        ],
        out_specs=pl.BlockSpec((tm, tn), lambda i, j, k: (i, j)),
        scratch_shapes=[pltpu.VMEM((tm, tn), jnp.float32)],
        compiler_params=pltpu.CompilerParams(
            dimension_semantics=("parallel", "parallel", "arbitrary")),
    )(x, w_t, b.reshape(1, N))


# --------------------------- Attention kernel ---------------------------------
def attn_kernel(q_ref, k_ref, v_ref, bias_ref, o_ref, p_ref=None, *,
                headers, d_k, write_attn):
    # q_ref: (1, tq, D); k_ref / v_ref: (1, Sk, D); bias_ref: (1, 1, tq, Sk)
    q = q_ref[0] * (1.0 / math.sqrt(d_k))          # scale the (smaller) q side once
    k = k_ref[0]
    v = v_ref[0]
    bias = bias_ref[0, 0].astype(jnp.float32)      # additive mask bias, shared by heads

    # contract the last dims of q and k directly (MXU consumes k^T, no explicit .T)
    dims = (((1,), (1,)), ((), ()))
    ctx = []
    for h in range(headers):                       # static unroll over heads
        sl = slice(h * d_k, (h + 1) * d_k)
        s = lax.dot_general(q[:, sl], k[:, sl], dims,
                            preferred_element_type=jnp.float32) + bias
        m = jnp.max(s, axis=-1, keepdims=True)
        e = jnp.exp(s - m)
        p = e * pl.reciprocal(jnp.sum(e, axis=-1, keepdims=True), approx=True)
        if write_attn:
            p_ref[0, h] = p
        ctx.append(jnp.dot(p, v[:, sl], preferred_element_type=jnp.float32))

    # lane-dense (tq, d_model) store -> (B, Sq, d_model) output; no glue transpose
    o_ref[0] = jnp.concatenate(ctx, axis=-1).astype(o_ref.dtype)


def pallas_attention(q, k, v, bias, headers, *, return_attn=True, tq=128):
    """q: (B,Sq,D), k/v: (B,Sk,D), bias: (B,1,Sq,Sk) bf16 additive mask."""
    B, Sq, D = q.shape
    Sk = k.shape[1]
    d_k = D // headers
    tq = _pick_tile(Sq, tq)
    grid = (B, Sq // tq)

    ctx_shape = jax.ShapeDtypeStruct((B, Sq, D), jnp.float32)
    ctx_spec = pl.BlockSpec((1, tq, D), lambda b, qi: (b, qi, 0))
    if return_attn:
        out_shape = (ctx_shape,
                     jax.ShapeDtypeStruct((B, headers, Sq, Sk), jnp.float32))
        out_specs = (ctx_spec,
                     pl.BlockSpec((1, headers, tq, Sk), lambda b, qi: (b, 0, qi, 0)))
    else:
        out_shape = ctx_shape
        out_specs = ctx_spec

    kernel = functools.partial(attn_kernel, headers=headers, d_k=d_k,
                               write_attn=return_attn)
    result = pl.pallas_call(
        kernel,
        out_shape=out_shape,
        grid=grid,
        in_specs=[
            pl.BlockSpec((1, tq, D), lambda b, qi: (b, qi, 0)),
            pl.BlockSpec((1, Sk, D), lambda b, qi: (b, 0, 0)),
            pl.BlockSpec((1, Sk, D), lambda b, qi: (b, 0, 0)),
            pl.BlockSpec((1, 1, tq, Sk), lambda b, qi: (b, 0, qi, 0)),
        ],
        out_specs=out_specs,
        compiler_params=pltpu.CompilerParams(
            dimension_semantics=("parallel", "parallel")),
    )(q, k, v, bias)

    if return_attn:
        ctx, p_attn = result
        return ctx, p_attn
    return result, None


# ------------------------------ Module glue -----------------------------------
def init_params(key, d_model):
    """4 nn.Linear(d_model, d_model) layers, torch-layout weights (out, in)."""
    params = []
    bound = 1.0 / math.sqrt(d_model)
    for _ in range(4):
        kw, kb, key = jax.random.split(key, 3)
        w = jax.random.uniform(kw, (d_model, d_model), jnp.float32, -bound, bound)
        b = jax.random.uniform(kb, (d_model,), jnp.float32, -bound, bound)
        params.append((w, b))
    return params


@functools.partial(jax.jit, static_argnums=(5, 6, 7, 8))
def _mha_impl(params, query, key, value, mask, headers, d_model,
              fused_qkv, return_attn):
    B, Sq, _ = query.shape
    Sk = key.shape[1]
    (wq, bq), (wk, bk), (wv, bv), (wo, bo) = params

    if fused_qkv:
        # self-attention: one (D, 3D) matmul, activations read from HBM once
        w_qkv = jnp.concatenate([wq.T, wk.T, wv.T], axis=1)
        b_qkv = jnp.concatenate([bq, bk, bv], axis=0)
        qkv = pallas_linear(query.reshape(B * Sq, d_model), w_qkv, b_qkv)
        q, k, v = jnp.split(qkv.reshape(B, Sq, 3 * d_model), 3, axis=-1)
    else:
        q = pallas_linear(query.reshape(B * Sq, d_model), wq.T, bq).reshape(B, Sq, d_model)
        k = pallas_linear(key.reshape(B * Sk, d_model), wk.T, bk).reshape(B, Sk, d_model)
        v = pallas_linear(value.reshape(B * Sk, d_model), wv.T, bv).reshape(B, Sk, d_model)

    # additive attention bias in bf16 (half the mask bytes, single add in-kernel).
    # exp(score - 65500) underflows to exactly 0, matching masked_fill for any
    # row with at least one kept position (rows are never fully masked here).
    if mask is None:
        bias = jnp.zeros((B, 1, Sq, Sk), jnp.bfloat16)
    else:
        bias = jnp.where(mask == 0, -65500.0, 0.0).astype(jnp.bfloat16)
        bias = jnp.broadcast_to(bias, (B, 1, Sq, Sk))

    ctx, p_attn = pallas_attention(q, k, v, bias, headers, return_attn=return_attn)

    # ctx is already (B, Sq, d_model): feed the output projection directly
    out = pallas_linear(ctx.reshape(B * Sq, d_model), wo.T, bo).reshape(B, Sq, d_model)
    return out, p_attn


def mha_forward(params, query, key, value, mask, headers, d_model,
                return_attn=True):
    assert d_model % headers == 0
    fused_qkv = (query is key) and (key is value)      # static dispatch outside jit
    return _mha_impl(params, query, key, value, mask, headers, d_model,
                     fused_qkv, return_attn)


# ----------------------------- Pure-JAX reference -----------------------------
def mha_reference(params, query, key, value, mask, headers, d_model):
    B, Sq, _ = query.shape
    d_k = d_model // headers
    (wq, bq), (wk, bk), (wv, bv), (wo, bo) = params

    def proj(x, w, b):
        y = x @ w.T + b
        return y.reshape(B, -1, headers, d_k).transpose(0, 2, 1, 3)

    q, k, v = proj(query, wq, bq), proj(key, wk, bk), proj(value, wv, bv)
    score = jnp.einsum("bhqd,bhkd->bhqk", q, k / math.sqrt(d_k))
    if mask is not None:
        score = jnp.where(mask == 0, -65500.0, score)
    p = jax.nn.softmax(score, axis=-1)
    ctx = jnp.einsum("bhqk,bhkd->bhqd", p, v)
    x = ctx.transpose(0, 2, 1, 3).reshape(B, Sq, d_model)
    return x @ wo.T + bo, p


# ------------------------------------ main -------------------------------------
if __name__ == "__main__":
    B, S, d_model, headers = 2, 8, 32, 4
    dropout = 0.1  # identity at inference

    root = jax.random.PRNGKey(0)
    kp, kx, kq, kk, kv = jax.random.split(root, 5)
    params = init_params(kp, d_model)

    # causal-style mask (0 = masked), broadcast over heads like torch.masked_fill
    mask = jnp.tril(jnp.ones((S, S), jnp.int32))[None, None, :, :]
    mask = jnp.broadcast_to(mask, (B, 1, S, S))

    # tolerances loosened vs pure-f32 reference because of the approximate EUP
    # reciprocal in the softmax normalization (uniform per-row scale factor).
    RTOL = ATOL = 2e-2

    # --- self-attention (query is key is value): fused-QKV path ---------------
    x = jax.random.normal(kx, (B, S, d_model), jnp.float32)
    out, attn = mha_forward(params, x, x, x, mask, headers, d_model)
    out = jax.block_until_ready(out)
    attn = jax.block_until_ready(attn)
    ref_out, ref_attn = mha_reference(params, x, x, x, mask, headers, d_model)
    assert jnp.allclose(out, ref_out, rtol=RTOL, atol=ATOL), "self-attn output mismatch"
    assert jnp.allclose(attn, ref_attn, rtol=RTOL, atol=ATOL), "self-attn p_attn mismatch"

    # --- cross-attention (distinct q / k / v): separate projections -----------
    q_in = jax.random.normal(kq, (B, S, d_model), jnp.float32)
    k_in = jax.random.normal(kk, (B, S, d_model), jnp.float32)
    v_in = jax.random.normal(kv, (B, S, d_model), jnp.float32)
    out2, attn2 = mha_forward(params, q_in, k_in, v_in, mask, headers, d_model)
    out2 = jax.block_until_ready(out2)
    ref_out2, ref_attn2 = mha_reference(params, q_in, k_in, v_in, mask, headers, d_model)
    assert jnp.allclose(out2, ref_out2, rtol=RTOL, atol=ATOL), "cross-attn output mismatch"
    assert jnp.allclose(attn2, ref_attn2, rtol=RTOL, atol=ATOL), "cross-attn p_attn mismatch"

    print("KERNEL_OK")
</pallas_src>

<mosaic_0001>
module attributes {stable_mosaic.version = 11 : i64} {
  func.func @linear_kernel(%arg0: i32, %arg1: i32, %arg2: i32, %arg3: memref<16x32xf32, #tpu.memory_space<vmem>>, %arg4: memref<32x96xf32, #tpu.memory_space<vmem>>, %arg5: memref<1x96xf32, #tpu.memory_space<vmem>>, %arg6: memref<16x96xf32, #tpu.memory_space<vmem>>, %arg7: memref<16x96xf32, #tpu.memory_space<vmem>>) attributes {dimension_semantics = [#tpu.dimension_semantics<parallel>, #tpu.dimension_semantics<parallel>, #tpu.dimension_semantics<arbitrary>], iteration_bounds = array<i64: 1, 1, 1>, scalar_prefetch = 0 : i64, scratch_operands = 1 : i64, tpu.core_type = #tpu.core_type<tc>, window_params = [{transform_indices = @transform_0, window_bounds = array<i64: 16, 32>}, {transform_indices = @transform_1, window_bounds = array<i64: 32, 96>}, {transform_indices = @transform_2, window_bounds = array<i64: 1, 96>}, {transform_indices = @transform_3, window_bounds = array<i64: 16, 96>}]} {
    %c0_i32 = arith.constant 0 : i32
    %0 = arith.cmpi eq, %arg2, %c0_i32 : i32
    %1 = arith.extui %0 : i1 to i32
    %c0_i32_0 = arith.constant 0 : i32
    %2 = arith.cmpi ne, %1, %c0_i32_0 : i32
    scf.if %2 {
      %cst_10 = arith.constant 0.000000e+00 : f32
      %12 = vector.broadcast %cst_10 : f32 to vector<16x96xf32>
      %c0_11 = arith.constant 0 : index
      %c0_12 = arith.constant 0 : index
      %13 = vector.load %arg7[%c0_11, %c0_12] : memref<16x96xf32, #tpu.memory_space<vmem>>, vector<16x96xf32>
      tpu.vector_store %arg7[%c0_11, %c0_12], %12 {strides = array<i32>} : memref<16x96xf32, #tpu.memory_space<vmem>>, vector<16x96xf32>,
    } else {
    }
    %c0 = arith.constant 0 : index
    %c0_1 = arith.constant 0 : index
    %3 = vector.load %arg7[%c0, %c0_1] : memref<16x96xf32, #tpu.memory_space<vmem>>, vector<16x96xf32>
    %c0_2 = arith.constant 0 : index
    %c0_3 = arith.constant 0 : index
    %4 = vector.load %arg3[%c0_2, %c0_3] : memref<16x32xf32, #tpu.memory_space<vmem>>, vector<16x32xf32>
    %c0_4 = arith.constant 0 : index
    %c0_5 = arith.constant 0 : index
    %5 = vector.load %arg4[%c0_4, %c0_5] : memref<32x96xf32, #tpu.memory_space<vmem>>, vector<32x96xf32>
    %cst = arith.constant dense<0.000000e+00> : vector<16x96xf32>
    %6 = tpu.matmul %4, %5, %cst {dimension_numbers = #tpu.dot_dimension_numbers<[1], [0], [0], [1], [0, 0, 1, 1], [], []>} : vector<16x32xf32>, vector<32x96xf32>, vector<16x96xf32> -> vector<16x96xf32>
    %7 = arith.addf %3, %6 : vector<16x96xf32>
    %c0_6 = arith.constant 0 : index
    %c0_7 = arith.constant 0 : index
    %8 = vector.load %arg7[%c0_6, %c0_7] : memref<16x96xf32, #tpu.memory_space<vmem>>, vector<16x96xf32>
    tpu.vector_store %arg7[%c0_6, %c0_7], %7 {strides = array<i32>} : memref<16x96xf32, #tpu.memory_space<vmem>>, vector<16x96xf32>,
    %c0_i32_8 = arith.constant 0 : i32
    %9 = arith.cmpi eq, %arg2, %c0_i32_8 : i32
    %10 = arith.extui %9 : i1 to i32
    %c0_i32_9 = arith.constant 0 : i32
    %11 = arith.cmpi ne, %10, %c0_i32_9 : i32
    scf.if %11 {
      %c0_10 = arith.constant 0 : index
      %c0_11 = arith.constant 0 : index
      %12 = vector.load %arg7[%c0_10, %c0_11] : memref<16x96xf32, #tpu.memory_space<vmem>>, vector<16x96xf32>
      %c0_12 = arith.constant 0 : index
      %c0_13 = arith.constant 0 : index
      %13 = vector.load %arg5[%c0_12, %c0_13] : memref<1x96xf32, #tpu.memory_space<vmem>>, vector<1x96xf32>
      %14 = vector.broadcast %13 : vector<1x96xf32> to vector<16x96xf32>
      %15 = arith.addf %12, %14 : vector<16x96xf32>
      %c0_14 = arith.constant 0 : index
      %c0_15 = arith.constant 0 : index
      %16 = vector.load %arg6[%c0_14, %c0_15] : memref<16x96xf32, #tpu.memory_space<vmem>>, vector<16x96xf32>
      tpu.vector_store %arg6[%c0_14, %c0_15], %15 {strides = array<i32>} : memref<16x96xf32, #tpu.memory_space<vmem>>, vector<16x96xf32>,
    } else {
    }
    return
  }
  func.func @transform_0(%arg0: i32, %arg1: i32, %arg2: i32) -> (i32, i32) {
    %c0_i32 = arith.constant 0 : i32
    return %arg0, %arg2 : i32, i32
  }
  func.func @transform_1(%arg0: i32, %arg1: i32, %arg2: i32) -> (i32, i32) {
    %c0_i32 = arith.constant 0 : i32
    return %arg2, %arg1 : i32, i32
  }
  func.func @transform_2(%arg0: i32, %arg1: i32, %arg2: i32) -> (i32, i32) {
    %c0_i32 = arith.constant 0 : i32
    %c0_i32_0 = arith.constant 0 : i32
    return %c0_i32, %arg1 : i32, i32
  }
  func.func @transform_3(%arg0: i32, %arg1: i32, %arg2: i32) -> (i32, i32) {
    %c0_i32 = arith.constant 0 : i32
    return %arg0, %arg1 : i32, i32
  }
}

module attributes {stable_mosaic.version = 11 : i64} {
  func.func @linear_kernel(%arg0: i32, %arg1: i32, %arg2: i32, %arg3: memref<16x32xf32, #tpu.memory_space<vmem>>, %arg4: memref<32x32xf32, #tpu.memory_space<vmem>>, %arg5: memref<1x32xf32, #tpu.memory_space<vmem>>, %arg6: memref<16x32xf32, #tpu.memory_space<vmem>>, %arg7: memref<16x32xf32, #tpu.memory_space<vmem>>) attributes {dimension_semantics = [#tpu.dimension_semantics<parallel>, #tpu.dimension_semantics<parallel>, #tpu.dimension_semantics<arbitrary>], iteration_bounds = array<i64: 1, 1, 1>, scalar_prefetch = 0 : i64, scratch_operands = 1 : i64, tpu.core_type = #tpu.core_type<tc>, window_params = [{transform_indices = @transform_0, window_bounds = array<i64: 16, 32>}, {transform_indices = @transform_1, window_bounds = array<i64: 32, 32>}, {transform_indices = @transform_2, window_bounds = array<i64: 1, 32>}, {transform_indices = @transform_3, window_bounds = array<i64: 16, 32>}]} {
    %c0_i32 = arith.constant 0 : i32
    %0 = arith.cmpi eq, %arg2, %c0_i32 : i32
    %1 = arith.extui %0 : i1 to i32
    %c0_i32_0 = arith.constant 0 : i32
    %2 = arith.cmpi ne, %1, %c0_i32_0 : i32
    scf.if %2 {
      %cst_10 = arith.constant 0.000000e+00 : f32
      %12 = vector.broadcast %cst_10 : f32 to vector<16x32xf32>
      %c0_11 = arith.constant 0 : index
      %c0_12 = arith.constant 0 : index
      %13 = vector.load %arg7[%c0_11, %c0_12] : memref<16x32xf32, #tpu.memory_space<vmem>>, vector<16x32xf32>
      tpu.vector_store %arg7[%c0_11, %c0_12], %12 {strides = array<i32>} : memref<16x32xf32, #tpu.memory_space<vmem>>, vector<16x32xf32>,
    } else {
    }
    %c0 = arith.constant 0 : index
    %c0_1 = arith.constant 0 : index
    %3 = vector.load %arg7[%c0, %c0_1] : memref<16x32xf32, #tpu.memory_space<vmem>>, vector<16x32xf32>
    %c0_2 = arith.constant 0 : index
    %c0_3 = arith.constant 0 : index
    %4 = vector.load %arg3[%c0_2, %c0_3] : memref<16x32xf32, #tpu.memory_space<vmem>>, vector<16x32xf32>
    %c0_4 = arith.constant 0 : index
    %c0_5 = arith.constant 0 : index
    %5 = vector.load %arg4[%c0_4, %c0_5] : memref<32x32xf32, #tpu.memory_space<vmem>>, vector<32x32xf32>
    %cst = arith.constant dense<0.000000e+00> : vector<16x32xf32>
    %6 = tpu.matmul %4, %5, %cst {dimension_numbers = #tpu.dot_dimension_numbers<[1], [0], [0], [1], [0, 0, 1, 1], [], []>} : vector<16x32xf32>, vector<32x32xf32>, vector<16x32xf32> -> vector<16x32xf32>
    %7 = arith.addf %3, %6 : vector<16x32xf32>
    %c0_6 = arith.constant 0 : index
    %c0_7 = arith.constant 0 : index
    %8 = vector.load %arg7[%c0_6, %c0_7] : memref<16x32xf32, #tpu.memory_space<vmem>>, vector<16x32xf32>
    tpu.vector_store %arg7[%c0_6, %c0_7], %7 {strides = array<i32>} : memref<16x32xf32, #tpu.memory_space<vmem>>, vector<16x32xf32>,
    %c0_i32_8 = arith.constant 0 : i32
    %9 = arith.cmpi eq, %arg2, %c0_i32_8 : i32
    %10 = arith.extui %9 : i1 to i32
    %c0_i32_9 = arith.constant 0 : i32
    %11 = arith.cmpi ne, %10, %c0_i32_9 : i32
    scf.if %11 {
      %c0_10 = arith.constant 0 : index
      %c0_11 = arith.constant 0 : index
      %12 = vector.load %arg7[%c0_10, %c0_11] : memref<16x32xf32, #tpu.memory_space<vmem>>, vector<16x32xf32>
      %c0_12 = arith.constant 0 : index
      %c0_13 = arith.constant 0 : index
      %13 = vector.load %arg5[%c0_12, %c0_13] : memref<1x32xf32, #tpu.memory_space<vmem>>, vector<1x32xf32>
      %14 = vector.broadcast %13 : vector<1x32xf32> to vector<16x32xf32>
      %15 = arith.addf %12, %14 : vector<16x32xf32>
      %c0_14 = arith.constant 0 : index
      %c0_15 = arith.constant 0 : index
      %16 = vector.load %arg6[%c0_14, %c0_15] : memref<16x32xf32, #tpu.memory_space<vmem>>, vector<16x32xf32>
      tpu.vector_store %arg6[%c0_14, %c0_15], %15 {strides = array<i32>} : memref<16x32xf32, #tpu.memory_space<vmem>>, vector<16x32xf32>,
    } else {
    }
    return
  }
  func.func @transform_0(%arg0: i32, %arg1: i32, %arg2: i32) -> (i32, i32) {
    %c0_i32 = arith.constant 0 : i32
    return %arg0, %arg2 : i32, i32
  }
  func.func @transform_1(%arg0: i32, %arg1: i32, %arg2: i32) -> (i32, i32) {
    %c0_i32 = arith.constant 0 : i32
    return %arg2, %arg1 : i32, i32
  }
  func.func @transform_2(%arg0: i32, %arg1: i32, %arg2: i32) -> (i32, i32) {
    %c0_i32 = arith.constant 0 : i32
    %c0_i32_0 = arith.constant 0 : i32
    return %c0_i32, %arg1 : i32, i32
  }
  func.func @transform_3(%arg0: i32, %arg1: i32, %arg2: i32) -> (i32, i32) {
    %c0_i32 = arith.constant 0 : i32
    return %arg0, %arg1 : i32, i32
  }
}

module attributes {stable_mosaic.version = 11 : i64} {
  func.func @attn_kernel(%arg0: i32, %arg1: i32, %arg2: memref<1x8x32xf32, #tpu.memory_space<vmem>>, %arg3: memref<1x8x32xf32, #tpu.memory_space<vmem>>, %arg4: memref<1x8x32xf32, #tpu.memory_space<vmem>>, %arg5: memref<1x1x8x8xbf16, #tpu.memory_space<vmem>>, %arg6: memref<1x8x32xf32, #tpu.memory_space<vmem>>, %arg7: memref<1x4x8x8xf32, #tpu.memory_space<vmem>>) attributes {dimension_semantics = [#tpu.dimension_semantics<parallel>, #tpu.dimension_semantics<parallel>], iteration_bounds = array<i64: 2, 1>, scalar_prefetch = 0 : i64, scratch_operands = 0 : i64, tpu.core_type = #tpu.core_type<tc>, window_params = [{transform_indices = @transform_0, window_bounds = array<i64: 1, 8, 32>}, {transform_indices = @transform_1, window_bounds = array<i64: 1, 8, 32>}, {transform_indices = @transform_2, window_bounds = array<i64: 1, 8, 32>}, {transform_indices = @transform_3, window_bounds = array<i64: 1, 1, 8, 8>}, {transform_indices = @transform_4, window_bounds = array<i64: 1, 8, 32>}, {transform_indices = @transform_5, window_bounds = array<i64: 1, 4, 8, 8>}]} {
    %c0 = arith.constant 0 : index
    %c0_0 = arith.constant 0 : index
    %c0_1 = arith.constant 0 : index
    %0 = vector.load %arg2[%c0, %c0_0, %c0_1] : memref<1x8x32xf32, #tpu.memory_space<vmem>>, vector<1x8x32xf32>
    %1 = vector.shape_cast %0 : vector<1x8x32xf32> to vector<8x32xf32>
    %cst = arith.constant 0.353553385 : f32
    %2 = vector.broadcast %cst : f32 to vector<8x32xf32>
    %3 = arith.mulf %1, %2 : vector<8x32xf32>
    %c0_2 = arith.constant 0 : index
    %c0_3 = arith.constant 0 : index
    %c0_4 = arith.constant 0 : index
    %4 = vector.load %arg3[%c0_2, %c0_3, %c0_4] : memref<1x8x32xf32, #tpu.memory_space<vmem>>, vector<1x8x32xf32>
    %5 = vector.shape_cast %4 : vector<1x8x32xf32> to vector<8x32xf32>
    %c0_5 = arith.constant 0 : index
    %c0_6 = arith.constant 0 : index
    %c0_7 = arith.constant 0 : index
    %6 = vector.load %arg4[%c0_5, %c0_6, %c0_7] : memref<1x8x32xf32, #tpu.memory_space<vmem>>, vector<1x8x32xf32>
    %7 = vector.shape_cast %6 : vector<1x8x32xf32> to vector<8x32xf32>
    %c0_8 = arith.constant 0 : index
    %c0_9 = arith.constant 0 : index
    %c0_10 = arith.constant 0 : index
    %c0_11 = arith.constant 0 : index
    %8 = vector.load %arg5[%c0_8, %c0_9, %c0_10, %c0_11] : memref<1x1x8x8xbf16, #tpu.memory_space<vmem>>, vector<1x1x8x8xbf16>
    %9 = vector.shape_cast %8 : vector<1x1x8x8xbf16> to vector<8x8xbf16>
    %10 = arith.extf %9 : vector<8x8xbf16> to vector<8x8xf32>
    %11 = vector.extract_strided_slice %3 {offsets = [0, 0], sizes = [8, 8], strides = [1, 1]} : vector<8x32xf32> to vector<8x8xf32>
    %12 = vector.extract_strided_slice %5 {offsets = [0, 0], sizes = [8, 8], strides = [1, 1]} : vector<8x32xf32> to vector<8x8xf32>
    %cst_12 = arith.constant dense<0.000000e+00> : vector<8x8xf32>
    %13 = tpu.matmul %11, %12, %cst_12 {dimension_numbers = #tpu.dot_dimension_numbers<[1], [1], [0], [0], [0, 0, 1, 0], [], []>} : vector<8x8xf32>, vector<8x8xf32>, vector<8x8xf32> -> vector<8x8xf32>
    %14 = arith.addf %13, %10 : vector<8x8xf32>
    %cst_13 = arith.constant dense<0xFF800000> : vector<8xf32>
    %15 = vector.multi_reduction <maximumf>, %14, %cst_13 [1] : vector<8x8xf32> to vector<8xf32>
    %16 = vector.shape_cast %15 : vector<8xf32> to vector<8x1xf32>
    %17 = vector.broadcast %16 : vector<8x1xf32> to vector<8x8xf32>
    %18 = arith.subf %14, %17 : vector<8x8xf32>
    %19 = math.exp %18 : vector<8x8xf32>
    %cst_14 = arith.constant dense<0.000000e+00> : vector<8xf32>
    %20 = vector.multi_reduction <add>, %19, %cst_14 [1] : vector<8x8xf32> to vector<8xf32>
    %21 = vector.shape_cast %20 : vector<8xf32> to vector<8x1xf32>
    %22 = tpu.reciprocal %21 {approx = true} : vector<8x1xf32> -> vector<8x1xf32>
    %23 = vector.broadcast %22 : vector<8x1xf32> to vector<8x8xf32>
    %24 = arith.mulf %19, %23 : vector<8x8xf32>
    %c0_15 = arith.constant 0 : index
    %c0_16 = arith.constant 0 : index
    %c0_17 = arith.constant 0 : index
    %c0_18 = arith.constant 0 : index
    %25 = vector.load %arg7[%c0_15, %c0_16, %c0_17, %c0_18] : memref<1x4x8x8xf32, #tpu.memory_space<vmem>>, vector<1x1x8x8xf32>
    %26 = vector.shape_cast %25 : vector<1x1x8x8xf32> to vector<8x8xf32>
    %27 = vector.shape_cast %24 : vector<8x8xf32> to vector<1x1x8x8xf32>
    tpu.vector_store %arg7[%c0_15, %c0_16, %c0_17, %c0_18], %27 {strides = array<i32>} : memref<1x4x8x8xf32, #tpu.memory_space<vmem>>, vector<1x1x8x8xf32>,
    %28 = vector.extract_strided_slice %7 {offsets = [0, 0], sizes = [8, 8], strides = [1, 1]} : vector<8x32xf32> to vector<8x8xf32>
    %cst_19 = arith.constant dense<0.000000e+00> : vector<8x8xf32>
    %29 = tpu.matmul %24, %28, %cst_19 {dimension_numbers = #tpu.dot_dimension_numbers<[1], [0], [0], [1], [0, 0, 1, 1], [], []>} : vector<8x8xf32>, vector<8x8xf32>, vector<8x8xf32> -> vector<8x8xf32>
    %30 = vector.extract_strided_slice %3 {offsets = [0, 8], sizes = [8, 8], strides = [1, 1]} : vector<8x32xf32> to vector<8x8xf32>
    %31 = vector.extract_strided_slice %5 {offsets = [0, 8], sizes = [8, 8], strides = [1, 1]} : vector<8x32xf32> to vector<8x8xf32>
    %cst_20 = arith.constant dense<0.000000e+00> : vector<8x8xf32>
    %32 = tpu.matmul %30, %31, %cst_20 {dimension_numbers = #tpu.dot_dimension_numbers<[1], [1], [0], [0], [0, 0, 1, 0], [], []>} : vector<8x8xf32>, vector<8x8xf32>, vector<8x8xf32> -> vector<8x8xf32>
    %33 = arith.addf %32, %10 : vector<8x8xf32>
    %cst_21 = arith.constant dense<0xFF800000> : vector<8xf32>
    %34 = vector.multi_reduction <maximumf>, %33, %cst_21 [1] : vector<8x8xf32> to vector<8xf32>
    %35 = vector.shape_cast %34 : vector<8xf32> to vector<8x1xf32>
    %36 = vector.broadcast %35 : vector<8x1xf32> to vector<8x8xf32>
    %37 = arith.subf %33, %36 : vector<8x8xf32>
    %38 = math.exp %37 : vector<8x8xf32>
    %cst_22 = arith.constant dense<0.000000e+00> : vector<8xf32>
    %39 = vector.multi_reduction <add>, %38, %cst_22 [1] : vector<8x8xf32> to vector<8xf32>
    %40 = vector.shape_cast %39 : vector<8xf32> to vector<8x1xf32>
    %41 = tpu.reciprocal %40 {approx = true} : vector<8x1xf32> -> vector<8x1xf32>
    %42 = vector.broadcast %41 : vector<8x1xf32> to vector<8x8xf32>
    %43 = arith.mulf %38, %42 : vector<8x8xf32>
    %c0_23 = arith.constant 0 : index
    %c1 = arith.constant 1 : index
    %c0_24 = arith.constant 0 : index
    %c0_25 = arith.constant 0 : index
    %44 = vector.load %arg7[%c0_23, %c1, %c0_24, %c0_25] : memref<1x4x8x8xf32, #tpu.memory_space<vmem>>, vector<1x1x8x8xf32>
    %45 = vector.shape_cast %44 : vector<1x1x8x8xf32> to vector<8x8xf32>
    %46 = vector.shape_cast %43 : vector<8x8xf32> to vector<1x1x8x8xf32>
    tpu.vector_store %arg7[%c0_23, %c1, %c0_24, %c0_25], %46 {strides = array<i32>} : memref<1x4x8x8xf32, #tpu.memory_space<vmem>>, vector<1x1x8x8xf32>,
    %47 = vector.extract_strided_slice %7 {offsets = [0, 8], sizes = [8, 8], strides = [1, 1]} : vector<8x32xf32> to vector<8x8xf32>
    %cst_26 = arith.constant dense<0.000000e+00> : vector<8x8xf32>
    %48 = tpu.matmul %43, %47, %cst_26 {dimension_numbers = #tpu.dot_dimension_numbers<[1], [0], [0], [1], [0, 0, 1, 1], [], []>} : vector<8x8xf32>, vector<8x8xf32>, vector<8x8xf32> -> vector<8x8xf32>
    %49 = vector.extract_strided_slice %3 {offsets = [0, 16], sizes = [8, 8], strides = [1, 1]} : vector<8x32xf32> to vector<8x8xf32>
    %50 = vector.extract_strided_slice %5 {offsets = [0, 16], sizes = [8, 8], strides = [1, 1]} : vector<8x32xf32> to vector<8x8xf32>
    %cst_27 = arith.constant dense<0.000000e+00> : vector<8x8xf32>
    %51 = tpu.matmul %49, %50, %cst_27 {dimension_numbers = #tpu.dot_dimension_numbers<[1], [1], [0], [0], [0, 0, 1, 0], [], []>} : vector<8x8xf32>, vector<8x8xf32>, vector<8x8xf32> -> vector<8x8xf32>
    %52 = arith.addf %51, %10 : vector<8x8xf32>
    %cst_28 = arith.constant dense<0xFF800000> : vector<8xf32>
    %53 = vector.multi_reduction <maximumf>, %52, %cst_28 [1] : vector<8x8xf32> to vector<8xf32>
    %54 = vector.shape_cast %53 : vector<8xf32> to vector<8x1xf32>
    %55 = vector.broadcast %54 : vector<8x1xf32> to vector<8x8xf32>
    %56 = arith.subf %52, %55 : vector<8x8xf32>
    %57 = math.exp %56 : vector<8x8xf32>
    %cst_29 = arith.constant dense<0.000000e+00> : vector<8xf32>
    %58 = vector.multi_reduction <add>, %57, %cst_29 [1] : vector<8x8xf32> to vector<8xf32>
    %59 = vector.shape_cast %58 : vector<8xf32> to vector<8x1xf32>
    %60 = tpu.reciprocal %59 {approx = true} : vector<8x1xf32> -> vector<8x1xf32>
    %61 = vector.broadcast %60 : vector<8x1xf32> to vector<8x8xf32>
    %62 = arith.mulf %57, %61 : vector<8x8xf32>
    %c0_30 = arith.constant 0 : index
    %c2 = arith.constant 2 : index
    %c0_31 = arith.constant 0 : index
    %c0_32 = arith.constant 0 : index
    %63 = vector.load %arg7[%c0_30, %c2, %c0_31, %c0_32] : memref<1x4x8x8xf32, #tpu.memory_space<vmem>>, vector<1x1x8x8xf32>
    %64 = vector.shape_cast %63 : vector<1x1x8x8xf32> to vector<8x8xf32>
    %65 = vector.shape_cast %62 : vector<8x8xf32> to vector<1x1x8x8xf32>
    tpu.vector_store %arg7[%c0_30, %c2, %c0_31, %c0_32], %65 {strides = array<i32>} : memref<1x4x8x8xf32, #tpu.memory_space<vmem>>, vector<1x1x8x8xf32>,
    %66 = vector.extract_strided_slice %7 {offsets = [0, 16], sizes = [8, 8], strides = [1, 1]} : vector<8x32xf32> to vector<8x8xf32>
    %cst_33 = arith.constant dense<0.000000e+00> : vector<8x8xf32>
    %67 = tpu.matmul %62, %66, %cst_33 {dimension_numbers = #tpu.dot_dimension_numbers<[1], [0], [0], [1], [0, 0, 1, 1], [], []>} : vector<8x8xf32>, vector<8x8xf32>, vector<8x8xf32> -> vector<8x8xf32>
    %68 = vector.extract_strided_slice %3 {offsets = [0, 24], sizes = [8, 8], strides = [1, 1]} : vector<8x32xf32> to vector<8x8xf32>
    %69 = vector.extract_strided_slice %5 {offsets = [0, 24], sizes = [8, 8], strides = [1, 1]} : vector<8x32xf32> to vector<8x8xf32>
    %cst_34 = arith.constant dense<0.000000e+00> : vector<8x8xf32>
    %70 = tpu.matmul %68, %69, %cst_34 {dimension_numbers = #tpu.dot_dimension_numbers<[1], [1], [0], [0], [0, 0, 1, 0], [], []>} : vector<8x8xf32>, vector<8x8xf32>, vector<8x8xf32> -> vector<8x8xf32>
    %71 = arith.addf %70, %10 : vector<8x8xf32>
    %cst_35 = arith.constant dense<0xFF800000> : vector<8xf32>
    %72 = vector.multi_reduction <maximumf>, %71, %cst_35 [1] : vector<8x8xf32> to vector<8xf32>
    %73 = vector.shape_cast %72 : vector<8xf32> to vector<8x1xf32>
    %74 = vector.broadcast %73 : vector<8x1xf32> to vector<8x8xf32>
    %75 = arith.subf %71, %74 : vector<8x8xf32>
    %76 = math.exp %75 : vector<8x8xf32>
    %cst_36 = arith.constant dense<0.000000e+00> : vector<8xf32>
    %77 = vector.multi_reduction <add>, %76, %cst_36 [1] : vector<8x8xf32> to vector<8xf32>
    %78 = vector.shape_cast %77 : vector<8xf32> to vector<8x1xf32>
    %79 = tpu.reciprocal %78 {approx = true} : vector<8x1xf32> -> vector<8x1xf32>
    %80 = vector.broadcast %79 : vector<8x1xf32> to vector<8x8xf32>
    %81 = arith.mulf %76, %80 : vector<8x8xf32>
    %c0_37 = arith.constant 0 : index
    %c3 = arith.constant 3 : index
    %c0_38 = arith.constant 0 : index
    %c0_39 = arith.constant 0 : index
    %82 = vector.load %arg7[%c0_37, %c3, %c0_38, %c0_39] : memref<1x4x8x8xf32, #tpu.memory_space<vmem>>, vector<1x1x8x8xf32>
    %83 = vector.shape_cast %82 : vector<1x1x8x8xf32> to vector<8x8xf32>
    %84 = vector.shape_cast %81 : vector<8x8xf32> to vector<1x1x8x8xf32>
    tpu.vector_store %arg7[%c0_37, %c3, %c0_38, %c0_39], %84 {strides = array<i32>} : memref<1x4x8x8xf32, #tpu.memory_space<vmem>>, vector<1x1x8x8xf32>,
    %85 = vector.extract_strided_slice %7 {offsets = [0, 24], sizes = [8, 8], strides = [1, 1]} : vector<8x32xf32> to vector<8x8xf32>
    %cst_40 = arith.constant dense<0.000000e+00> : vector<8x8xf32>
    %86 = tpu.matmul %81, %85, %cst_40 {dimension_numbers = #tpu.dot_dimension_numbers<[1], [0], [0], [1], [0, 0, 1, 1], [], []>} : vector<8x8xf32>, vector<8x8xf32>, vector<8x8xf32> -> vector<8x8xf32>
    %87 = tpu.concatenate %29, %48, %67, %86 in 1 : vector<8x8xf32>, vector<8x8xf32>, vector<8x8xf32>, vector<8x8xf32> -> vector<8x32xf32>
    %c0_41 = arith.constant 0 : index
    %c0_42 = arith.constant 0 : index
    %c0_43 = arith.constant 0 : index
    %88 = vector.load %arg6[%c0_41, %c0_42, %c0_43] : memref<1x8x32xf32, #tpu.memory_space<vmem>>, vector<1x8x32xf32>
    %89 = vector.shape_cast %88 : vector<1x8x32xf32> to vector<8x32xf32>
    %90 = vector.shape_cast %87 : vector<8x32xf32> to vector<1x8x32xf32>
    tpu.vector_store %arg6[%c0_41, %c0_42, %c0_43], %90 {strides = array<i32>} : memref<1x8x32xf32, #tpu.memory_space<vmem>>, vector<1x8x32xf32>,
    return
  }
  func.func @transform_0(%arg0: i32, %arg1: i32) -> (i32, i32, i32) {
    %c0_i32 = arith.constant 0 : i32
    %c0_i32_0 = arith.constant 0 : i32
    return %arg0, %arg1, %c0_i32 : i32, i32, i32
  }
  func.func @transform_1(%arg0: i32, %arg1: i32) -> (i32, i32, i32) {
    %c0_i32 = arith.constant 0 : i32
    %c0_i32_0 = arith.constant 0 : i32
    %c0_i32_1 = arith.constant 0 : i32
    return %arg0, %c0_i32, %c0_i32_0 : i32, i32, i32
  }
  func.func @transform_2(%arg0: i32, %arg1: i32) -> (i32, i32, i32) {
    %c0_i32 = arith.constant 0 : i32
    %c0_i32_0 = arith.constant 0 : i32
    %c0_i32_1 = arith.constant 0 : i32
    return %arg0, %c0_i32, %c0_i32_0 : i32, i32, i32
  }
  func.func @transform_3(%arg0: i32, %arg1: i32) -> (i32, i32, i32, i32) {
    %c0_i32 = arith.constant 0 : i32
    %c0_i32_0 = arith.constant 0 : i32
    %c0_i32_1 = arith.constant 0 : i32
    return %arg0, %c0_i32, %arg1, %c0_i32_0 : i32, i32, i32, i32
  }
  func.func @transform_4(%arg0: i32, %arg1: i32) -> (i32, i32, i32) {
    %c0_i32 = arith.constant 0 : i32
    %c0_i32_0 = arith.constant 0 : i32
    return %arg0, %arg1, %c0_i32 : i32, i32, i32
  }
  func.func @transform_5(%arg0: i32, %arg1: i32) -> (i32, i32, i32, i32) {
    %c0_i32 = arith.constant 0 : i32
    %c0_i32_0 = arith.constant 0 : i32
    %c0_i32_1 = arith.constant 0 : i32
    return %arg0, %c0_i32, %arg1, %c0_i32_0 : i32, i32, i32, i32
  }
}

</mosaic_0001>

<bundles_post_ra>
// kernel: _mha_impl.3
= control target key start
LH: loop header
LB: loop body
LE: loop exit
PB: predicated region body
PF: predicated region fallthrough
CT: control target
= control target key end

     0   :  { %vm29_vm0 = vcmask 261120   ;;  %vm18_vm1 = vcmask 785408   ;;  %v165_v3 = vmov 0.0   ;;  %s221_s1 = inlined_call_operand.vmem [shape: f32[32,96], index: 1, kind: input, shape index: {}]   ;;  %s222_s0 = inlined_call_operand.vmem [shape: f32[16,32], index: 0, kind: input, shape index: {}]   ;;  %s223_s2 = inlined_call_operand.vmem [shape: f32[1,96], index: 2, kind: input, shape index: {}]   ;;  %s224_s3 = inlined_call_operand.vmem [shape: f32[16,96], index: 3, kind: output, shape index: {}]  }
   0x1   :  { %v25_v0 = vld [vmem:[%s221_s1] sm:$0xff]  ;;  %v26_v1 = vld [vmem:[%s221_s1 + $0x8] sm:$0xff]  ;;  %v27_v2 = vld [vmem:[%s221_s1 + $0x10] sm:$0xff]  ;;  %20 = vst.msk [vmem:[#allocation2 + $0x8] sm:$0xff] %vm18_vm1, %v165_v3 }
   0x2   :  { %19 = vst.msk [vmem:[#allocation2] sm:$0xff] %vm18_vm1, %v165_v3  ;;  %v156_v4 = vpack.c.bf16 %v26_v1, %v25_v0  ;;  %v28_v5 = vld [vmem:[%s221_s1 + $0x18] sm:$0xff]  ;;  %v23_v6 = vld [vmem:[%s222_s0] sm:$0xff]  ;;  %v24_v8 = vld [vmem:[%s222_s0 + $0x8] sm:$0xff] }
   0x3   :  { %v160_v7 = vpack.c.bf16 %v28_v5, %v27_v2  ;;  %153 = vmatprep.mubr.msk.f32.mxu0 %vm29_vm0, %v23_v6  ;;  %v138_v15 = vld [vmem:[%s223_s2] ss:$0 sm:$0xff] }
   0x4   :  { %157 = vmatprep.subr.bf16.mxu0 %v156_v4 }
   0x5   :  { %159 = vmatpush3.bf16.msra.mxu0 %v156_v4 }
   0x6   :  { %161 = vmatprep.subr.bf16.mxu0 %v160_v7 }
   0x8   :  { %v22_v9 = vld [vmem:[#allocation2 + $0x8] sm:$0xff] }
   0x9   :  { %163 = vmatpush3.bf16.msra.mxu0 %v160_v7  ;;  %v21_v10 = vld [vmem:[#allocation2] sm:$0xff] }
   0xc   :  { %154 = vmatmul.mubr.msk.f32.vlgmr.msra.gmra.mrb[0].mxu0 %vm29_vm0, %v24_v8 }
  0xdf   :  { %v155_v11 = vpop.f32.mrb[0].mxu0 }
  0xe0   :  { %v112_v12 = vadd.f32 %v155_v11, %v22_v9  ;;  %v102_v13 = vpop.f32.mrb[1].mxu0 }
  0xe1   :  { %v111_v14 = vadd.f32 %v102_v13, %v21_v10 }
  0xe2   :  { %115 = vst.msk [vmem:[#allocation2 + $0x8] sm:$0xff] %vm18_vm1, %v112_v12 }
  0xe3   :  { %114 = vst.msk [vmem:[#allocation2] sm:$0xff] %vm18_vm1, %v111_v14 }
  0xe9   :  { %v120_v16 = vld [vmem:[#allocation2 + $0x8] sm:$0xff] }
  0xea   :  { %v129_v17 = vadd.f32 %v138_v15, %v120_v16  ;;  %v119_v18 = vld [vmem:[#allocation2] sm:$0xff] }
  0xeb   :  { %v128_v19 = vadd.f32 %v138_v15, %v119_v18 }
  0xec   :  { %131 = vst.msk [vmem:[%s224_s3 + $0x8] sm:$0xff] %vm18_vm1, %v129_v17 }
  0xed   :  { %130 = vst.msk [vmem:[%s224_s3] sm:$0xff] %vm18_vm1, %v128_v19 }

// kernel: _mha_impl.5
= control target key start
LH: loop header
LB: loop body
LE: loop exit
PB: predicated region body
PF: predicated region fallthrough
CT: control target
= control target key end

     0   :  { %vm19_vm0 = vcmask 261120   ;;  %v204_v6 = vmov 0.0   ;;  %s269_s0 = inlined_call_operand.vmem [shape: f32[16,32], index: 0, kind: input, shape index: {}]   ;;  %s270_s1 = inlined_call_operand.vmem [shape: f32[32,32], index: 1, kind: input, shape index: {}]   ;;  %s271_s2 = inlined_call_operand.vmem [shape: f32[1,32], index: 2, kind: input, shape index: {}]   ;;  %s272_s3 = inlined_call_operand.hbm [shape: f32[16,32], index: 3, kind: output, shape index: {}]  }
   0x1   :  { %v26_v0 = vld [vmem:[%s270_s1] sm:$0xff]  ;;  %v27_v1 = vld [vmem:[%s270_s1 + $0x8] sm:$0xff]  ;;  %v28_v2 = vld [vmem:[%s270_s1 + $0x10] sm:$0xff]  ;;  %21 = vst.msk [vmem:[#allocation2 + $0x8] sm:$0xff] %vm19_vm0, %v204_v6 }
   0x2   :  { %v168_v3 = vpack.c.bf16 %v27_v1, %v26_v0  ;;  %v29_v4 = vld [vmem:[%s270_s1 + $0x18] sm:$0xff]  ;;  %v24_v5 = vld [vmem:[%s269_s0] sm:$0xff]  ;;  %20 = vst.msk [vmem:[#allocation2] sm:$0xff] %vm19_vm0, %v204_v6 }
   0x3   :  { %v172_v7 = vpack.c.bf16 %v29_v4, %v28_v2  ;;  %165 = vmatprep.mubr.msk.f32.mxu0 %vm19_vm0, %v24_v5 }
   0x4   :  { %8 = vsyncpa [#allocation4], 0  ;;  %169 = vmatprep.subr.bf16.mxu0 %v168_v3  ;;  %v25_v8 = vld [vmem:[%s269_s0 + $0x8] sm:$0xff]  ;;  %v150_v15 = vld [vmem:[%s271_s2] ss:$0 sm:$0xff]  ;;  %s205_s25 = smov [#allocation3]  }
   0x5   :  { %171 = vmatpush3.bf16.msra.mxu0 %v168_v3  ;;  %s137_s26 = sshll.u32 %s205_s25, 4  ;;  %s138_s26 = int_to_ptr.vmem [resolvable:$true] %s137_s26 }
   0x6   :  { %173 = vmatprep.subr.bf16.mxu0 %v172_v7  ;;  %s180_s0 = scalar_lea.vmem %s138_s26, 256  ;;  %p185_p1 = scmp.lt.s32.totalorder %s138_s26, %s138_s26 }
   0x7   :  { %p181_p0 = scmp.ne.s32.totalorder %s138_s26, %s180_s0  ;;  %p186_p2 = scmp.lt.s32.totalorder %s180_s0, %s180_s0 }
   0x8   :  { %v23_v9 = vld [vmem:[#allocation2 + $0x8] sm:$0xff] }
   0x9   :  { %175 = vmatpush3.bf16.msra.mxu0 %v172_v7  ;;  %v22_v10 = vld [vmem:[#allocation2] sm:$0xff]  ;;  %p187_p3 = por %p186_p2, %p185_p1 }
   0xb   :  { %p188_p4 = pnand %p187_p3, %p181_p0 }
   0xc   :  { %166 = vmatmul.mubr.msk.f32.vlgmr.msra.gmra.mrb[0].mxu0 %vm19_vm0, %v25_v8 }
  0xdf   :  { %v167_v11 = vpop.f32.mrb[0].mxu0 }
  0xe0   :  { %v113_v12 = vadd.f32 %v167_v11, %v23_v9  ;;  %v103_v13 = vpop.f32.mrb[1].mxu0 }
  0xe1   :  { %v112_v14 = vadd.f32 %v103_v13, %v22_v10 }
  0xe2   :  { %115 = vst.msk [vmem:[#allocation2 + $0x8] sm:$0xff] %vm19_vm0, %v113_v12 }
  0xe3   :  { %114 = vst.msk [vmem:[#allocation2] sm:$0xff] %vm19_vm0, %v112_v14 }
  0xe9   :  { %v120_v16 = vld [vmem:[#allocation2 + $0x8] sm:$0xff] }
  0xea   :  { %v119_v17 = vld [vmem:[#allocation2] sm:$0xff]  ;;  %v129_v18 = vadd.f32 %v150_v15, %v120_v16 }
  0xeb   :  { %v128_v19 = vadd.f32 %v150_v15, %v119_v17 }
  0xec   :  { %131 = vst.msk [vmem:[#allocation3 + $0x8] sm:$0xff] %vm19_vm0, %v129_v18 }
  0xed   :  { %130 = vst.msk [vmem:[#allocation3] sm:$0xff] %vm19_vm0, %v128_v19 }
  0xee   :  { %191 = shalt.err (!%p188_p4)
}
  0xef   :  { %s192_s28 = scalar_lea.hbm %s272_s3, 256 }
  0xf0   :  { %p193_p5 = scmp.ne.s32.totalorder %s272_s3, %s192_s28  ;;  %p196_p6 = scmp.lt.u32.totalorder %s192_s28, %s272_s3 }
  0xf2   :  { %p198_p7 = pnand %p196_p6, %p193_p5 }
  0xf4   :  { %201 = shalt.err (!%p198_p7)
}
  0xf5   :  { %s206_s6 = smov 128   ;;  %s207_s7 = smov 8  }
  0xf6   :  { %143 = dma.vmem_to_hbm [thread:$0]  %s138_s26, 256, %s272_s3, [#allocation4], %s206_s6, %s206_s6, %s207_s7  }
  0xf7   :  { %202 = dma.done.wait [#allocation4], 256  }
  0xf8   :  { %203 = vsyncadd [#allocation4], 4294967040 }
  0xf9   :  { %147 = vsyncpa [#allocation4], 1 }

// kernel: _mha_impl.4
= control target key start
LH: loop header
LB: loop body
LE: loop exit
PB: predicated region body
PF: predicated region fallthrough
CT: control target
= control target key end

     0   :  { %11 = vsyncpa [#allocation3], 0  ;;  %s1692_s0 = inlined_call_operand.vmem [shape: f32[2,8,32], index: 0, kind: input, shape index: {}]   ;;  %s1693_s1 = inlined_call_operand.vmem [shape: f32[2,8,32], index: 1, kind: input, shape index: {}]   ;;  %s1694_s2 = inlined_call_operand.vmem [shape: f32[2,8,32], index: 2, kind: input, shape index: {}]   ;;  %s1695_s3 = inlined_call_operand.vmem [shape: bf16[2,1,8,8], index: 3, kind: input, shape index: {}]   ;;  %s1696_s4 = inlined_call_operand.vmem [shape: f32[2,8,32], index: 4, kind: output, shape index: {0}]   ;;  %s1697_s5 = inlined_call_operand.hbm [shape: f32[2,4,8,8], index: 5, kind: output, shape index: {1}]  }
   0x1   :  { %13 = vsyncpa [#allocation3 + $0x1], 0  ;;  %s1473_s18 = smov 0   ;;  %s1475_s19 = smov 0  }
   0x2   :  { %s1477_s20 = smov 0   ;;  %s1479_s21 = smov 0  }
   0x3   :  { %s1481_s22 = smov 0   ;;  %s1483_s23 = smov 0  }
   0x4 LB: > { %s1185_s24 = sadd.s32 4294967295, %s1431_s23   ;;  %s1186_s25 = sadd.s32 4294967294, %s1431_s23   ;;  %s1431_s23 = sphi %s1483_s23, %s19_s23   ;;  %s1427_s22 = sphi %s1481_s22, %s1704_s22   ;;  %s1423_s21 = sphi %s1479_s21, %s1703_s21   ;;  %s1419_s20 = sphi %s1477_s20, %s1702_s20   ;;  %s1415_s19 = sphi %s1475_s19, %s1701_s19   ;;  %s1411_s18 = sphi %s1473_s18, %s1700_s18  }
   0x5   : > { %s31_s26 = sadd.s32 1, %s1427_s22  ;;  %s176_s27 = sadd.s32 1, %s1419_s20 }
   0x6   : > { %p33_p0 = scmp.ge.s32.totalorder %s31_s26, 2  ;;  %p186_p1 = scmp.ne.s32.totalorder %s1419_s20, %s1415_s19 }
   0x7   : > { %p187_p2 = scmp.eq.s32.totalorder %s1185_s24, 1  ;;  %p192_p3 = scmp.ne.s32.totalorder %s1415_s19, %s1411_s18 }
   0x8   : > { %s1706_s26 = smov (%p33_p0, %s31_s26), 0  ;;  %p193_p5 = scmp.eq.s32.totalorder %s1186_s25, 1 }
   0x9   : > { %p1513_p4 = por %p187_p2, %p186_p1  ;;  %s171_s29 = ssub.s32 %s1427_s22, %s1706_s26 }
   0xa   : > { %p1189_p6 = scmp.ge.s32.totalorder %s1431_s23, 1  ;;  %p174_p7 = scmp.eq.s32.totalorder %s171_s29, 0 }
   0xb   : > { %p1520_p8 = por %p193_p5, %p192_p3  ;;  %p245_p9 = scmp.lt.s32.totalorder %s1431_s23, 3 }
   0xc   : > { %s1526_s6 = scalar_select %p174_p7, %s1419_s20, %s176_s27  }
   0xd   : > { %p246_p10 = pnand %p1189_p6, %p245_p9 }
   0xe   : > { %p297_p11 = scmp.lt.s32.totalorder (!%p246_p10), %s1423_s21, 1  ;;  %v1433_v0 = vmov (!%p246_p10), 0.0   ;;  %vm1434_vm0 = vmmov (!%p246_p10), 0   ;;  %vm332_vm1 = vcmask (!%p246_p10), 64512   ;;  %s1435_s25 = smov (!%p246_p10), 120  }
   0xf   : > { %249 = sbr.rel (%p246_p10) target bundleno = 1472 (0x5c0), region = 36  ;;  %1233 = vmatprep.subr.mxu0 (!%p246_p10), %v1433_v0  ;;  %1235 = vmatprep.mubr.msk.f32.mxu0 (!%p246_p10), %vm1434_vm0, %v1433_v0  ;;  %s1436_s27 = smov (!%p246_p10), 112  }
  0x10   : > { %1238 = vmatprep.subr.mxu1 (!%p246_p10), %v1433_v0  ;;  %1240 = vmatprep.mubr.msk.f32.mxu1 (!%p246_p10), %vm1434_vm0, %v1433_v0  ;;  %s1437_s29 = smov (!%p246_p10), 104   ;;  %s1216_s16 = sshll.u32 (!%p246_p10), %s1423_s21, 9 }
  0x16   : > { %s298_s7 = scalar_select %p297_p11, %s1423_s21, 1 }
  0x17   : > { %s1440_s21 = smov [#allocation2]  }
  0x18   : > { %s1536_s8 = sshll.u32 %s298_s7, 3  ;;  %s1194_s15 = sshll.u32 %s298_s7, 2 }
  0x19   : > { %s307_s11 = scalar_lea.vmem %s1693_s1, %s1536_s8  ;;  %s303_s14 = scalar_lea.vmem %s1692_s0, %s1536_s8 }
  0x1a   : > { %v328_v1 = vld [vmem:[%s307_s11] sm:$0xff]  ;;  %s318_s24 = scalar_lea.vmem %s1695_s3, %s1194_s15  ;;  %s311_s10 = scalar_lea.vmem %s1694_s2, %s1536_s8 }
  0x1b   : > { %v326_v2 = vld [vmem:[%s303_s14] sm:$0xff]  ;;  %1234 = vmatpush3.xpose.msk.msra.mxu0 %vm332_vm1, %v328_v1  ;;  %496 = vrot.lane.b32.xlu1 %v328_v1, %s1435_s25  ;;  %s294_s11 = sand.u32 1, %s1415_s19   ;;  %s1438_s14 = smov 8  }
  0x1c   : > { %v327_v3 = vmul.f32 0.35355338, %v326_v2  ;;  %1248 = vmatprep.subr.mxu0 %v1433_v0  ;;  %v330_v4 = vld [vmem:[%s318_s24] sm:$0xf]  ;;  %s1190_s12 = sshll.u32 %s294_s11, 5  ;;  %s1439_s15 = smov 16  }
  0x1d   : > { %v1554_v5 = vunpack.c.l.bf16 %v330_v4  ;;  %v1568_v15 = vld [vmem:[%s311_s10] sm:$0xff]  ;;  %s1576_s13 = scalar_lea.vmem [#allocation2], %s1190_s12  ;;  %s1357_s9 = sshll.u32 %s1440_s21, 4  ;;  %s1358_s9 = int_to_ptr.vmem [resolvable:$false] %s1357_s9 }
  0x1e   : > { %1236 = vmatmul.mubr.msk.f32.vlgmr.msra.gmra.mrb[0].mxu0 %vm332_vm1, %v327_v3  ;;  %1239 = vmatpush3.msra.mxu1 %v1568_v15  ;;  %s1040_s17 = sshll.u32 %s1576_s13, 4  ;;  %s1359_s10 = scalar_lea.vmem %s1358_s9, 1024  ;;  %s1635_s17 = int_to_ptr.vmem [resolvable:$true] %s1040_s17 }
  0x1f   : > { %1250 = vmatprep.mubr.msk.f32.mxu0 %vm1434_vm0, %v1433_v0  ;;  %494 = vrot.lane.b32.xlu1 %v327_v3, %s1435_s25  ;;  %s1353_s7 = scalar_lea.vmem %s1635_s17, 512  ;;  %p1360_p1 = scmp.lt.s32.totalorder %s1635_s17, %s1358_s9 }
  0x20   : > { %1243 = vmatprep.subr.mxu1 %v1433_v0  ;;  %p1354_p12 = scmp.ne.s32.totalorder %s1635_s17, %s1353_s7  ;;  %p1361_p2 = scmp.lt.s32.totalorder %s1359_s10, %s1353_s7 }
  0x22   : > { %p1355_p13 = pnand %p1354_p12, %p1513_p4  ;;  %p1362_p3 = por %p1361_p2, %p1360_p1 }
  0x23   : > { %662 = vrot.lane.b32.xlu1 %v327_v3, %s1436_s27 }
  0x24   : > { %p1356_p0 = pneg %p1355_p13 }
  0x26   : > { %p1363_p5 = pnand %p1362_p3, %p1356_p0 }
  0x27   : > { %831 = vrot.lane.b32.xlu1 %v328_v1, %s1437_s29 }
  0x2b   : > { %829 = vrot.lane.b32.xlu1 %v327_v3, %s1437_s29 }
  0x8d   : > { %v497_v16 = vpop.permute.xlu1 %496 }
  0x91   : > { %v495_v18 = vpop.permute.xlu1 %494 }
  0x95   : > { %v663_v20 = vpop.permute.xlu1 %662 }
  0x99   : > { %v832_v23 = vpop.permute.xlu1 %831 }
  0x9d   : > { %v830_v24 = vpop.permute.xlu1 %829 }
  0xf1   : > { %v405_v6 = vpop.f32.mrb[0].mxu0 }
  0xf2   : > { %v406_v7 = vadd.f32 %v405_v6, %v1554_v5  ;;  %v1237_v8 = vpop.f32.mrb[1].mxu0 }
  0xf4   : > { %v409_v9 = vsel %vm332_vm1, %v406_v7, -inf }
  0xf5   : > { %410 = vmax.xlane.f32.xlu0 %v409_v9 }
 0x182   : > { %v411_v10 = vpop.xlane.xlu0 %410 }
 0x183   : > { %v412_v11 = vsub.f32 %v406_v7, %v411_v10 }
 0x185   : > { %v413_v12 = vmul.f32 1.442695, %v412_v11 }
 0x187   : > { %1337 = vpow2.f32 %v413_v12 }
 0x191   : > { %v1338_v13 = vpop.eup %1337 }
 0x192   : > { %v415_v14 = vsel %vm332_vm1, %v1338_v13, 0.0 }
 0x193   : > { %416 = vadd.xlane.f32.xlu0 %v415_v14 }
 0x1a9   : > { %664 = vrot.lane.b32.xlu0 %v328_v1, %s1436_s27 }
 0x220   : > { %v417_v17 = vpop.xlane.xlu0 %416 }
 0x221   : > { %1339 = vrcp.f32 %v417_v17 }
 0x224   : > { %v665_v22 = vpop.permute.xlu0 %664 }
 0x22b   : > { %v1340_v19 = vpop.eup %1339 }
 0x22c   : > { %v419_v21 = vmul.f32 %v1340_v19, %v1338_v13 }
 0x22e   : > { %420 = vst.msk [vmem:[%s1576_s13] sm:$0xff] %vm332_vm1, %v419_v21  ;;  %1241 = vmatmul.mubr.msk.f32.vlgmr.msra.gmra.mrb[0].mxu1 %vm332_vm1, %v419_v21 }
 0x22f   : > { %1244 = vmatpush3.xpose.msk.msra.mxu1 %vm332_vm1, %v497_v16  ;;  %1245 = vmatprep.mubr.msk.f32.mxu1 %vm1434_vm0, %v1433_v0 }
 0x230   : > { %1253 = vmatprep.subr.mxu1 %v1433_v0 }
 0x232   : > { %1246 = vmatmul.mubr.msk.f32.vlgmr.msra.gmra.mrb[2].mxu1 %vm332_vm1, %v495_v18 }
 0x233   : > { %1254 = vmatpush3.xpose.msk.msra.mxu1 %vm332_vm1, %v665_v22  ;;  %1255 = vmatprep.mubr.msk.f32.mxu1 %vm1434_vm0, %v1433_v0 }
 0x234   : > { %1263 = vmatprep.subr.mxu1 %v1433_v0 }
 0x236   : > { %1256 = vmatmul.mubr.msk.f32.vlgmr.msra.gmra.mrb[4].mxu1 %vm332_vm1, %v663_v20 }
 0x237   : > { %1264 = vmatpush3.xpose.msk.msra.mxu1 %vm332_vm1, %v832_v23  ;;  %1265 = vmatprep.mubr.msk.f32.mxu1 %vm1434_vm0, %v1433_v0 }
 0x23a   : > { %1266 = vmatmul.mubr.msk.f32.vlgmr.msra.gmra.mrb[6].mxu1 %vm332_vm1, %v830_v24 }
 0x301   : > { %v1595_v25 = vpop.f32.mrb[0].mxu1 }
 0x302   : > { %v1242_v26 = vpop.f32.mrb[1].mxu1 }
 0x305   : > { %v568_v27 = vpop.f32.mrb[2].mxu1 }
 0x306   : > { %v569_v28 = vadd.f32 %v568_v27, %v1554_v5  ;;  %v1247_v29 = vpop.f32.mrb[3].mxu1 }
 0x308   : > { %v572_v30 = vsel %vm332_vm1, %v569_v28, -inf }
 0x309   : > { %573 = vmax.xlane.f32.xlu1 %v572_v30  ;;  %v736_v31 = vpop.f32.mrb[4].mxu1 }
 0x30a   : > { %v737_v32 = vadd.f32 %v736_v31, %v1554_v5  ;;  %v1257_v33 = vpop.f32.mrb[5].mxu1 }
 0x30c   : > { %v740_v34 = vsel %vm332_vm1, %v737_v32, -inf }
 0x30d   : > { %741 = vmax.xlane.f32.xlu0 %v740_v34  ;;  %v903_v35 = vpop.f32.mrb[6].mxu1 }
 0x30e   : > { %v904_v36 = vadd.f32 %v903_v35, %v1554_v5  ;;  %v1267_v37 = vpop.f32.mrb[7].mxu1 }
 0x310   : > { %v907_v38 = vsel %vm332_vm1, %v904_v36, -inf }
 0x311   : > { %908 = vmax.xlane.f32.xlu1 %v907_v38 }
 0x396   : > { %v574_v39 = vpop.xlane.xlu1 %573 }
 0x397   : > { %v575_v40 = vsub.f32 %v569_v28, %v574_v39 }
 0x399   : > { %v576_v41 = vmul.f32 1.442695, %v575_v40 }
 0x39a   : > { %v742_v42 = vpop.xlane.xlu0 %741 }
 0x39b   : > { %1341 = vpow2.f32 %v576_v41  ;;  %v743_v43 = vsub.f32 %v737_v32, %v742_v42 }
 0x39d   : > { %v744_v44 = vmul.f32 1.442695, %v743_v43 }
 0x39e   : > { %v909_v49 = vpop.xlane.xlu1 %908 }
 0x39f   : > { %1343 = vpow2.f32 %v744_v44  ;;  %v910_v50 = vsub.f32 %v904_v36, %v909_v49 }
 0x3a1   : > { %v911_v51 = vmul.f32 1.442695, %v910_v50 }
 0x3a3   : > { %1345 = vpow2.f32 %v911_v51 }
 0x3a5   : > { %v1342_v45 = vpop.eup %1341 }
 0x3a6   : > { %v578_v46 = vsel %vm332_vm1, %v1342_v45, 0.0 }
 0x3a7   : > { %579 = vadd.xlane.f32.xlu1 %v578_v46 }
 0x3a9   : > { %v1344_v47 = vpop.eup %1343 }
 0x3aa   : > { %v746_v48 = vsel %vm332_vm1, %v1344_v47, 0.0 }
 0x3ab   : > { %747 = vadd.xlane.f32.xlu0 %v746_v48 }
 0x3ad   : > { %v1346_v52 = vpop.eup %1345 }
 0x3ae   : > { %v913_v53 = vsel %vm332_vm1, %v1346_v52, 0.0 }
 0x3b8   : > { %753 = vrot.lane.b32.xlu1 %v1568_v15, %s1436_s27  ;;  %s1633_s27 = scalar_lea.hbm %s1697_s5, %s1216_s16 }
 0x3c1   : > { %586 = vrot.lane.b32.xlu0 %v1568_v15, %s1435_s25 }
 0x3dc   : > { %914 = vadd.xlane.f32.xlu1 %v913_v53 }
 0x3ed   : > { %920 = vrot.lane.b32.xlu1 %v1568_v15, %s1437_s29  ;;  %s1639_s29 = scalar_lea.sflag [#allocation3], %s294_s11 }
 0x434   : > { %v580_v54 = vpop.xlane.xlu1 %579 }
 0x435   : > { %1347 = vrcp.f32 %v580_v54 }
 0x438   : > { %v748_v55 = vpop.xlane.xlu0 %747  ;;  %v754_v59 = vpop.permute.xlu1 %753 }
 0x439   : > { %1349 = vrcp.f32 %v748_v55 }
 0x43c   : > { %v587_v56 = vpop.permute.xlu0 %586 }
 0x43d   : > { %1249 = vmatpush3.msra.mxu0 %v587_v56 }
 0x43e   : > { %1258 = vmatprep.subr.mxu0 %v1433_v0 }
 0x43f   : > { %v1348_v57 = vpop.eup %1347 }
 0x440   : > { %v582_v58 = vmul.f32 %v1348_v57, %v1342_v45 }
 0x442   : > { %1201 = vst.msk [vmem:[%s1576_s13 + $0x8] sm:$0xff] %vm332_vm1, %v582_v58  ;;  %1251 = vmatmul.mubr.msk.f32.vlgmr.msra.gmra.mrb[2].mxu0 %vm332_vm1, %v582_v58 }
 0x443   : > { %v1350_v60 = vpop.eup %1349  ;;  %1259 = vmatpush3.msra.mxu0 %v754_v59  ;;  %1260 = vmatprep.mubr.msk.f32.mxu0 %vm1434_vm0, %v1433_v0 }
 0x444   : > { %v750_v61 = vmul.f32 %v1350_v60, %v1344_v47  ;;  %1268 = vmatprep.subr.mxu0 %v1433_v0 }
 0x446   : > { %1205 = vst.msk [vmem:[%s1576_s13 + $0x10] sm:$0xff] %vm332_vm1, %v750_v61  ;;  %1261 = vmatmul.mubr.msk.f32.vlgmr.msra.gmra.mrb[4].mxu0 %vm332_vm1, %v750_v61 }
 0x447   : > { %1270 = vmatprep.mubr.msk.f32.mxu0 %vm1434_vm0, %v1433_v0 }
 0x469   : > { %v915_v62 = vpop.xlane.xlu1 %914 }
 0x46a   : > { %1351 = vrcp.f32 %v915_v62 }
 0x46d   : > { %v921_v63 = vpop.permute.xlu1 %920 }
 0x46e   : > { %1269 = vmatpush3.msra.mxu0 %v921_v63 }
 0x474   : > { %v1352_v1 = vpop.eup %1351 }
 0x475   : > { %v917_v2 = vmul.f32 %v1352_v1, %v1346_v52 }
 0x477   : > { %1209 = vst.msk [vmem:[%s1576_s13 + $0x18] sm:$0xff] %vm332_vm1, %v917_v2  ;;  %1271 = vmatmul.mubr.msk.f32.vlgmr.msra.gmra.mrb[6].mxu0 %vm332_vm1, %v917_v2 }
 0x515   : > { %v658_v3 = vpop.f32.mrb[2].mxu0 }
 0x516   : > { %997 = vrot.lane.b32.xlu0 %v658_v3, %s1438_s14  ;;  %v1252_v4 = vpop.f32.mrb[3].mxu0 }
 0x519   : > { %v825_v0 = vpop.f32.mrb[4].mxu0 }
 0x51a   : > { %1001 = vrot.lane.b32.xlu1 %v825_v0, %s1439_s15  ;;  %v1262_v5 = vpop.f32.mrb[5].mxu0 }
 0x51b   : > { %1366 = shalt.err (!%p1363_p5)
}
 0x51c   : > { %s1367_s11 = scalar_lea.hbm %s1633_s27, 512  ;;  %s1371_s15 = scalar_lea.hbm %s1697_s5, 1024 }
 0x51d   : > { %p1368_p6 = scmp.ne.s32.totalorder %s1633_s27, %s1367_s11  ;;  %p1372_p10 = scmp.lt.u32.totalorder %s1633_s27, %s1697_s5 }
 0x51e   : > { %p1373_p11 = scmp.lt.u32.totalorder %s1371_s15, %s1367_s11  ;;  %p1375_p13 = scmp.lt.u32.totalorder %s1367_s11, %s1633_s27 }
 0x51f   : > { %p1369_p7 = pnand %p1368_p6, %p1513_p4 }
 0x520   : > { %p1374_p12 = por %p1373_p11, %p1372_p10 }
 0x521   : > { %p1370_p9 = pneg %p1369_p7 }
 0x522   : > { %p1376_p0 = por %p1375_p13, %p1374_p12 }
 0x524   : > { %p1377_p1 = pnand %p1376_p0, %p1370_p9 }
 0x526   : > { %1380 = shalt.err (!%p1377_p1)
}
 0x527   : > { %s1441_s25 = smov 128   ;;  %s1442_s7 = smov 24   ;;  %vm1009_vm2 = vcmask 130048   ;;  %vm1011_vm3 = vcmask 195584   ;;  %vm1013_vm4 = vcmask 261120  }
 0x528   : > { %1273 = dma.vmem_to_hbm [thread:$0]  (%p1513_p4), %s1635_s17, 512, %s1633_s27, %s1639_s29, %s1441_s25, %s1441_s25, %s1438_s14  }
 0x529   : > { %s325_s28 = scalar_lea.vmem %s1696_s4, %s1536_s8 }
 0x54a   : > { %v992_v6 = vpop.f32.mrb[6].mxu0 }
 0x54b   : > { %1005 = vrot.lane.b32.xlu0 %v992_v6, %s1442_s7  ;;  %v1272_v7 = vpop.f32.mrb[7].mxu0 }
 0x588   : > { %v998_v8 = vpop.permute.xlu0 %997 }
 0x589   : > { %v1008_v10 = vsel %vm332_vm1, %v1595_v25, %v998_v8 }
 0x58c   : > { %v1002_v9 = vpop.permute.xlu1 %1001 }
 0x58d   : > { %v1010_v11 = vsel %vm1009_vm2, %v1008_v10, %v1002_v9 }
 0x5bd   : > { %v1006_v12 = vpop.permute.xlu0 %1005 }
 0x5be   : > { %v1012_v13 = vsel %vm1011_vm3, %v1010_v11, %v1006_v12 }
 0x5bf   : > { %1014 = vst.msk [vmem:[%s325_s28] sm:$0xff] %vm1013_vm4, %v1012_v13 }
 0x5c0 PF: > { %p1279_p4 = scmp.ge.s32.totalorder %s1431_s23, 2  ;;  %s1065_s14 = sand.u32 1, %s1411_s18  }
 0x5c1   : > { %s1066_s17 = scalar_lea.sflag [#allocation3], %s1065_s14 }
 0x5c2   : > { %p1276_p2 = pnand %p1279_p4, %p1520_p8 }
 0x5c4   : > { %1406 = dma.done.wait (!%p1276_p2), %s1066_s17, 512  }
 0x5c5   : > { %1408 = vsyncadd (!%p1276_p2), %s1066_s17, 4294966784  ;;  %s19_s23 = sadd.s32 1, %s1431_s23   ;;  %s1700_s18 = smov %s1415_s19 }
 0x5c6   : > { %p16_p3 = scmp.ge.s32.totalorder %s19_s23, 4   ;;  %s1701_s19 = smov %s1419_s20 }
 0x5c7   : > { %s1702_s20 = smov %s1526_s6  ;;  %s1703_s21 = smov %s1427_s22 }
 0x5c8   : > { %s1704_s22 = smov %s1706_s26  ;;  %18 = sbr.rel (!%p16_p3) target bundleno = 4 (0x4), region = 95 }
 0x5cf   :  { %1071 = vsyncpa [#allocation3], 1 }
 0x5d0   :  { %1073 = vsyncpa [#allocation3 + $0x1], 1 }

</bundles_post_ra>
